<compile_context>
chip_gen: v6e
topology: v6e:2x2x1
jax: 0.10.0
libtpu: 0.0.40
codegen_flags: <defaults>
</compile_context>

<pallas_src>
import functools

import jax
import jax.numpy as jnp
from jax.experimental import pallas as pl
from jax.experimental.pallas import tpu as pltpu


def _layernorm_kernel(x_ref, g_ref, b_ref, o_ref, *, eps):
    # x_ref: (tm, D)   g_ref / b_ref: (1, D)   o_ref: (tm, D)
    x = x_ref[...].astype(jnp.float32)
    d = x.shape[-1]

    mean = jnp.mean(x, axis=-1, keepdims=True)
    centered = x - mean
    # torch.Tensor.std defaults to the unbiased estimator (divide by N-1).
    var = jnp.sum(centered * centered, axis=-1, keepdims=True) / max(d - 1, 1)
    std = jnp.sqrt(var)
    inv = 1.0 / (eps + std)

    y = g_ref[...].astype(jnp.float32) * centered * inv + b_ref[...].astype(jnp.float32)
    o_ref[...] = y.astype(o_ref.dtype)


def _round_up(v, m):
    return (v + m - 1) // m * m


@functools.partial(jax.jit, static_argnames=("eps", "tm"))
def layernorm_forward(x, gamma, beta, *, eps=1e-6, tm=256):
    """x: (..., features); gamma, beta: (features,) -> same shape/dtype as x."""
    orig_shape = x.shape
    D = orig_shape[-1]
    M = 1
    for s in orig_shape[:-1]:
        M *= s

    x2 = x.reshape(M, D)

    # Row tile: big enough to amortize the ~0.35 us per-grid-step overhead,
    # clamped for tiny inputs, and rows padded so no divisibility assert is
    # needed (padded rows normalize to `beta` and are sliced off afterwards).
    tm_eff = min(tm, _round_up(M, 8))
    Mp = _round_up(M, tm_eff)
    if Mp != M:
        x2 = jnp.pad(x2, ((0, Mp - M), (0, 0)))

    g2 = gamma.reshape(1, D)
    b2 = beta.reshape(1, D)

    bytes_per_elt = x.dtype.itemsize
    cost = pl.CostEstimate(
        flops=7 * Mp * D,
        transcendentals=Mp,  # one sqrt per row
        bytes_accessed=2 * Mp * D * bytes_per_elt + 2 * D * gamma.dtype.itemsize,
    )

    out = pl.pallas_call(
        functools.partial(_layernorm_kernel, eps=eps),
        out_shape=jax.ShapeDtypeStruct((Mp, D), x.dtype),
        grid_spec=pltpu.PrefetchScalarGridSpec(
            num_scalar_prefetch=0,
            grid=(Mp // tm_eff,),
            in_specs=[
                pl.BlockSpec((tm_eff, D), lambda i: (i, 0)),  # activation rows
                pl.BlockSpec((1, D), lambda i: (0, 0)),       # gamma (resident)
                pl.BlockSpec((1, D), lambda i: (0, 0)),       # beta  (resident)
            ],
            out_specs=pl.BlockSpec((tm_eff, D), lambda i: (i, 0)),
        ),
        compiler_params=pltpu.CompilerParams(
            dimension_semantics=("parallel",),
        ),
        cost_estimate=cost,
    )(x2, g2, b2)

    if Mp != M:
        out = out[:M]
    return out.reshape(orig_shape)


if __name__ == "__main__":
    # Small shapes consistent with the module: features = 512 (d_model).
    batch, seq, features = 2, 8, 512
    eps = 1e-6

    key = jax.random.PRNGKey(0)
    kx, kg, kb = jax.random.split(key, 3)

    x = jax.random.normal(kx, (batch, seq, features), jnp.float32)
    # PyTorch init is ones/zeros; use non-trivial values so the affine part
    # of the forward is actually exercised by the check.
    gamma = 1.0 + 0.1 * jax.random.normal(kg, (features,), jnp.float32)
    beta = 0.1 * jax.random.normal(kb, (features,), jnp.float32)

    out = layernorm_forward(x, gamma, beta, eps=eps)
    jax.block_until_ready(out)

    # Plain-JAX reference matching the PyTorch module exactly
    # (unbiased std, eps added to the std — not the variance).
    mean = jnp.mean(x, axis=-1, keepdims=True)
    std = jnp.std(x, axis=-1, keepdims=True, ddof=1)
    ref = gamma * (x - mean) / (eps + std) + beta

    assert out.shape == x.shape
    assert jnp.allclose(out, ref, atol=1e-4, rtol=1e-4)

    print("KERNEL_OK")
</pallas_src>

<mosaic_0001>
module attributes {stable_mosaic.version = 11 : i64} {
  func.func @_layernorm_kernel(%arg0: i32, %arg1: memref<16x512xf32, #tpu.memory_space<vmem>>, %arg2: memref<1x512xf32, #tpu.memory_space<vmem>>, %arg3: memref<1x512xf32, #tpu.memory_space<vmem>>, %arg4: memref<16x512xf32, #tpu.memory_space<vmem>>) attributes {dimension_semantics = [#tpu.dimension_semantics<parallel>], iteration_bounds = array<i64: 1>, scalar_prefetch = 0 : i64, scratch_operands = 0 : i64, tpu.core_type = #tpu.core_type<tc>, window_params = [{transform_indices = @transform_0, window_bounds = array<i64: 16, 512>}, {pipeline_mode = #tpu.pipeline_mode<synchronous>, transform_indices = @transform_1, window_bounds = array<i64: 1, 512>}, {pipeline_mode = #tpu.pipeline_mode<synchronous>, transform_indices = @transform_2, window_bounds = array<i64: 1, 512>}, {transform_indices = @transform_3, window_bounds = array<i64: 16, 512>}]} {
    %c0 = arith.constant 0 : index
    %c0_0 = arith.constant 0 : index
    %0 = vector.load %arg1[%c0, %c0_0] : memref<16x512xf32, #tpu.memory_space<vmem>>, vector<16x512xf32>
    %cst = arith.constant dense<0.000000e+00> : vector<16xf32>
    %1 = vector.multi_reduction <add>, %0, %cst [1] : vector<16x512xf32> to vector<16xf32>
    %2 = vector.shape_cast %1 : vector<16xf32> to vector<16x1xf32>
    %cst_1 = arith.constant 5.120000e+02 : f32
    %3 = vector.broadcast %cst_1 : f32 to vector<16x1xf32>
    %4 = arith.divf %2, %3 : vector<16x1xf32>
    %5 = vector.broadcast %4 : vector<16x1xf32> to vector<16x512xf32>
    %6 = arith.subf %0, %5 : vector<16x512xf32>
    %7 = arith.mulf %6, %6 : vector<16x512xf32>
    %cst_2 = arith.constant dense<0.000000e+00> : vector<16xf32>
    %8 = vector.multi_reduction <add>, %7, %cst_2 [1] : vector<16x512xf32> to vector<16xf32>
    %9 = vector.shape_cast %8 : vector<16xf32> to vector<16x1xf32>
    %cst_3 = arith.constant 5.110000e+02 : f32
    %10 = vector.broadcast %cst_3 : f32 to vector<16x1xf32>
    %11 = arith.divf %9, %10 : vector<16x1xf32>
    %12 = math.sqrt %11 : vector<16x1xf32>
    %cst_4 = arith.constant 9.99999997E-7 : f32
    %13 = vector.broadcast %cst_4 : f32 to vector<16x1xf32>
    %14 = arith.addf %13, %12 : vector<16x1xf32>
    %cst_5 = arith.constant 1.000000e+00 : f32
    %15 = vector.broadcast %cst_5 : f32 to vector<16x1xf32>
    %16 = arith.divf %15, %14 : vector<16x1xf32>
    %c0_6 = arith.constant 0 : index
    %c0_7 = arith.constant 0 : index
    %17 = vector.load %arg2[%c0_6, %c0_7] : memref<1x512xf32, #tpu.memory_space<vmem>>, vector<1x512xf32>
    %18 = vector.broadcast %17 : vector<1x512xf32> to vector<16x512xf32>
    %19 = arith.mulf %18, %6 : vector<16x512xf32>
    %20 = vector.broadcast %16 : vector<16x1xf32> to vector<16x512xf32>
    %21 = arith.mulf %19, %20 : vector<16x512xf32>
    %c0_8 = arith.constant 0 : index
    %c0_9 = arith.constant 0 : index
    %22 = vector.load %arg3[%c0_8, %c0_9] : memref<1x512xf32, #tpu.memory_space<vmem>>, vector<1x512xf32>
    %23 = vector.broadcast %22 : vector<1x512xf32> to vector<16x512xf32>
    %24 = arith.addf %21, %23 : vector<16x512xf32>
    %c0_10 = arith.constant 0 : index
    %c0_11 = arith.constant 0 : index
    %25 = vector.load %arg4[%c0_10, %c0_11] : memref<16x512xf32, #tpu.memory_space<vmem>>, vector<16x512xf32>
    tpu.vector_store %arg4[%c0_10, %c0_11], %24 {strides = array<i32>} : memref<16x512xf32, #tpu.memory_space<vmem>>, vector<16x512xf32>,
    return
  }
  func.func @transform_0(%arg0: i32) -> (i32, i32) {
    %c0_i32 = arith.constant 0 : i32
    %c0_i32_0 = arith.constant 0 : i32
    return %arg0, %c0_i32 : i32, i32
  }
  func.func @transform_1(%arg0: i32) -> (i32, i32) {
    %c0_i32 = arith.constant 0 : i32
    %c0_i32_0 = arith.constant 0 : i32
    %c0_i32_1 = arith.constant 0 : i32
    return %c0_i32, %c0_i32_0 : i32, i32
  }
  func.func @transform_2(%arg0: i32) -> (i32, i32) {
    %c0_i32 = arith.constant 0 : i32
    %c0_i32_0 = arith.constant 0 : i32
    %c0_i32_1 = arith.constant 0 : i32
    return %c0_i32, %c0_i32_0 : i32, i32
  }
  func.func @transform_3(%arg0: i32) -> (i32, i32) {
    %c0_i32 = arith.constant 0 : i32
    %c0_i32_0 = arith.constant 0 : i32
    return %arg0, %c0_i32 : i32, i32
  }
}

</mosaic_0001>

<bundles_post_ra>
// kernel: layernorm_forward.1
= control target key start
LH: loop header
LB: loop body
LE: loop exit
PB: predicated region body
PF: predicated region fallthrough
CT: control target
= control target key end

     0   :  { %8 = vsyncpa [#allocation3], 0  ;;  %s330_s0 = inlined_call_operand.hbm [shape: f32[16,512], index: 0, kind: input, shape index: {}]   ;;  %s331_s1 = inlined_call_operand.vmem [shape: f32[1,512], index: 1, kind: input, shape index: {}]   ;;  %s332_s2 = inlined_call_operand.vmem [shape: f32[1,512], index: 2, kind: input, shape index: {}]   ;;  %s333_s3 = inlined_call_operand.hbm [shape: f32[16,512], index: 3, kind: output, shape index: {}]  }
   0x1   :  { %9 = vsyncpa [#allocation4], 0  ;;  %s248_s12 = smov [#allocation2]  }
   0x2   :  { %s15_s13 = sshll.u32 %s248_s12, 4  ;;  %s16_s13 = int_to_ptr.vmem [resolvable:$true] %s15_s13 }
   0x3   :  { %s212_s14 = scalar_lea.vmem %s16_s13, 1024  ;;  %p217_p1 = scmp.lt.s32.totalorder %s16_s13, %s16_s13 }
   0x4   :  { %p213_p0 = scmp.ne.s32.totalorder %s16_s13, %s212_s14  ;;  %p218_p2 = scmp.lt.s32.totalorder %s212_s14, %s212_s14 }
   0x6   :  { %p219_p3 = por %p218_p2, %p217_p1 }
   0x8   :  { %p220_p4 = pnand %p219_p3, %p213_p0 }
   0xa   :  { %223 = shalt.err (!%p220_p4)
}
   0xb   :  { %s249_s15 = smov 512   ;;  %s250_s16 = smov 32  }
   0xc   :  { %21 = dma.hbm_to_vmem [thread:$0]  %s330_s0, 1024, %s16_s13, [#allocation3], %s249_s15, %s249_s15, %s250_s16  }
   0xd   :  { %244 = dma.done.wait [#allocation3], 1024  }
   0xe   :  { %245 = vsyncadd [#allocation3], 4294966272  ;;  %v29_v0 = vld [vmem:[#allocation2] sm:$0xff]  ;;  %v30_v1 = vld [vmem:[#allocation2 + $0x8] sm:$0xff]  ;;  %v101_v47 = vlaneseq }
   0xf   :  { %v31_v2 = vld [vmem:[#allocation2 + $0x10] sm:$0xff]  ;;  %v37_v3 = vadd.f32 %v30_v1, %v29_v0  ;;  %v33_v4 = vld [vmem:[#allocation2 + $0x20] sm:$0xff]  ;;  %v34_v5 = vld [vmem:[#allocation2 + $0x28] sm:$0xff] }
  0x10   :  { %v32_v6 = vld [vmem:[#allocation2 + $0x18] sm:$0xff]  ;;  %v35_v7 = vld [vmem:[#allocation2 + $0x30] sm:$0xff]  ;;  %v42_v8 = vadd.f32 %v34_v5, %v33_v4  ;;  %v102_v53 = vshrl.u32 %v101_v47, 7  ;;  %v99_v62 = vld [vmem:[%s331_s1] sm:$0xf]  ;;  %s251_s1 = smov [#allocation5]  }
  0x11   :  { %v38_v9 = vadd.f32 %v37_v3, %v31_v2  ;;  %v36_v10 = vld [vmem:[#allocation2 + $0x38] sm:$0xff] }
  0x12   :  { %v43_v11 = vadd.f32 %v42_v8, %v35_v7  ;;  %v103_v58 = vsub.s32 0, %v102_v53  ;;  %v107_v59 = vsub.s32 1, %v102_v53  ;;  %v111_v60 = vsub.s32 2, %v102_v53 }
  0x13   :  { %v39_v12 = vadd.f32 %v38_v9, %v32_v6  ;;  %v115_v61 = vsub.s32 3, %v102_v53 }
  0x14   :  { %v44_v13 = vadd.f32 %v43_v11, %v36_v10  ;;  %v104_v63 = vrot.slane %v99_v62, %v103_v58 }
  0x15   :  { %40 = vadd.xlane.f32.xlu0 %v39_v12  ;;  %v116_v3 = vrot.slane %v99_v62, %v115_v61 }
  0x19   :  { %45 = vadd.xlane.f32.xlu0 %v44_v13 }
  0x9e   :  { %v41_v14 = vpop.xlane.xlu0 %40 }
  0x9f   :  { %v48_v15 = vmul.f32 0.001953125, %v41_v14 }
  0xa1   :  { %v278_v16 = vsub.f32 %v29_v0, %v48_v15  ;;  %v280_v17 = vsub.f32 %v30_v1, %v48_v15  ;;  %v282_v18 = vsub.f32 %v31_v2, %v48_v15  ;;  %v284_v21 = vsub.f32 %v32_v6, %v48_v15  ;;  %v137_v1 = vld [vmem:[%s332_s2] sm:$0xf]  ;;  %s180_s2 = sshll.u32 %s251_s1, 4  ;;  %s181_s2 = int_to_ptr.vmem [resolvable:$true] %s180_s2 }
  0xa2   :  { %v46_v19 = vpop.xlane.xlu0 %45  ;;  %v108_v0 = vrot.slane %v99_v62, %v107_v59  ;;  %v112_v2 = vrot.slane %v99_v62, %v111_v60  ;;  %v150_v6 = vrot.slane %v137_v1, %v111_v60  ;;  %s224_s22 = scalar_lea.vmem %s181_s2, 1024  ;;  %p229_p6 = scmp.lt.s32.totalorder %s181_s2, %s181_s2 }
  0xa3   :  { %v49_v20 = vmul.f32 0.001953125, %v46_v19  ;;  %v58_v22 = vmul.f32 %v278_v16, %v278_v16  ;;  %v59_v23 = vmul.f32 %v280_v17, %v280_v17  ;;  %v60_v26 = vmul.f32 %v282_v18, %v282_v18  ;;  %p225_p5 = scmp.ne.s32.totalorder %s181_s2, %s224_s22  ;;  %p230_p7 = scmp.lt.s32.totalorder %s224_s22, %s224_s22 }
  0xa4   :  { %v61_v29 = vmul.f32 %v284_v21, %v284_v21  ;;  %v121_v8 = vmul.f32 %v104_v63, %v278_v16  ;;  %v122_v9 = vmul.f32 %v108_v0, %v280_v17  ;;  %v124_v11 = vmul.f32 %v116_v3, %v284_v21 }
  0xa5   :  { %v290_v24 = vsub.f32 %v33_v4, %v49_v20  ;;  %v292_v25 = vsub.f32 %v34_v5, %v49_v20  ;;  %v66_v27 = vadd.f32 %v59_v23, %v58_v22  ;;  %v296_v28 = vsub.f32 %v35_v7, %v49_v20  ;;  %p231_p8 = por %p230_p7, %p229_p6 }
  0xa6   :  { %v302_v32 = vsub.f32 %v36_v10, %v49_v20  ;;  %v142_v4 = vrot.slane %v137_v1, %v103_v58  ;;  %v146_v5 = vrot.slane %v137_v1, %v107_v59  ;;  %v154_v7 = vrot.slane %v137_v1, %v115_v61 }
  0xa7   :  { %v67_v30 = vadd.f32 %v66_v27, %v60_v26  ;;  %v62_v31 = vmul.f32 %v290_v24, %v290_v24  ;;  %v63_v33 = vmul.f32 %v292_v25, %v292_v25  ;;  %v64_v35 = vmul.f32 %v296_v28, %v296_v28  ;;  %p232_p9 = pnand %p231_p8, %p225_p5 }
  0xa8   :  { %v65_v37 = vmul.f32 %v302_v32, %v302_v32  ;;  %v123_v10 = vmul.f32 %v112_v2, %v282_v18  ;;  %v125_v27 = vmul.f32 %v104_v63, %v290_v24  ;;  %v127_v16 = vmul.f32 %v112_v2, %v296_v28 }
  0xa9   :  { %v68_v34 = vadd.f32 %v67_v30, %v61_v29  ;;  %v71_v36 = vadd.f32 %v63_v33, %v62_v31  ;;  %v126_v29 = vmul.f32 %v108_v0, %v292_v25  ;;  %v128_v17 = vmul.f32 %v116_v3, %v302_v32 }
  0xab   :  { %69 = vadd.xlane.f32.xlu1 %v68_v34  ;;  %v72_v38 = vadd.f32 %v71_v36, %v64_v35 }
  0xad   :  { %v73_v39 = vadd.f32 %v72_v38, %v65_v37 }
  0xaf   :  { %74 = vadd.xlane.f32.xlu1 %v73_v39 }
 0x134   :  { %v70_v40 = vpop.xlane.xlu1 %69 }
 0x135   :  { %v77_v41 = vmul.f32 0.0019569471, %v70_v40 }
 0x137   :  { %196 = vrsqrt.f32 %v77_v41  ;;  %vm81_vm0 = vcmp.eq.f32.partialorder %v77_v41, inf  ;;  %v84_v46 = vand.u32 2147483648, %v77_v41  ;;  %vm83_vm1 = vcmp.eq.f32.partialorder %v77_v41, 0.0 }
 0x138   :  { %v75_v42 = vpop.xlane.xlu1 %74 }
 0x139   :  { %v78_v43 = vmul.f32 0.0019569471, %v75_v42 }
 0x13b   :  { %198 = vrsqrt.f32 %v78_v43  ;;  %vm88_vm2 = vcmp.eq.f32.partialorder %v78_v43, inf  ;;  %v91_v54 = vand.u32 2147483648, %v78_v43  ;;  %vm90_vm3 = vcmp.eq.f32.partialorder %v78_v43, 0.0 }
 0x144   :  { %v197_v44 = vpop.eup %196 }
 0x145   :  { %v80_v45 = vmul.f32 %v197_v44, %v77_v41 }
 0x147   :  { %v82_v48 = vsel %vm81_vm0, %v77_v41, %v80_v45 }
 0x148   :  { %v85_v49 = vsel %vm83_vm1, %v84_v46, %v82_v48  ;;  %v199_v50 = vpop.eup %198 }
 0x149   :  { %v93_v51 = vadd.f32 1e-06, %v85_v49  ;;  %v87_v52 = vmul.f32 %v199_v50, %v78_v43 }
 0x14b   :  { %200 = vrcp.f32 %v93_v51  ;;  %v89_v55 = vsel %vm88_vm2, %v78_v43, %v87_v52 }
 0x14c   :  { %v92_v56 = vsel %vm90_vm3, %v91_v54, %v89_v55 }
 0x14d   :  { %v94_v57 = vadd.f32 1e-06, %v92_v56 }
 0x14f   :  { %202 = vrcp.f32 %v94_v57 }
 0x158   :  { %v201_v12 = vpop.eup %200 }
 0x159   :  { %v129_v13 = vmul.f32 %v201_v12, %v121_v8  ;;  %v130_v14 = vmul.f32 %v201_v12, %v122_v9  ;;  %v131_v15 = vmul.f32 %v201_v12, %v123_v10  ;;  %v132_v19 = vmul.f32 %v201_v12, %v124_v11 }
 0x15b   :  { %v159_v20 = vadd.f32 %v142_v4, %v129_v13  ;;  %v160_v22 = vadd.f32 %v146_v5, %v130_v14  ;;  %v161_v23 = vadd.f32 %v150_v6, %v131_v15  ;;  %v162_v26 = vadd.f32 %v154_v7, %v132_v19 }
 0x15c   :  { %v203_v18 = vpop.eup %202 }
 0x15d   :  { %167 = vst [vmem:[#allocation5] sm:$0xff] %v159_v20  ;;  %168 = vst [vmem:[#allocation5 + $0x8] sm:$0xff] %v160_v22  ;;  %v133_v21 = vmul.f32 %v203_v18, %v125_v27  ;;  %v134_v30 = vmul.f32 %v203_v18, %v126_v29  ;;  %v135_v31 = vmul.f32 %v203_v18, %v127_v16 }
 0x15e   :  { %169 = vst [vmem:[#allocation5 + $0x10] sm:$0xff] %v161_v23  ;;  %170 = vst [vmem:[#allocation5 + $0x18] sm:$0xff] %v162_v26  ;;  %v136_v33 = vmul.f32 %v203_v18, %v128_v17 }
 0x15f   :  { %v163_v34 = vadd.f32 %v142_v4, %v133_v21  ;;  %v164_v35 = vadd.f32 %v146_v5, %v134_v30  ;;  %v165_v24 = vadd.f32 %v150_v6, %v135_v31 }
 0x160   :  { %v166_v36 = vadd.f32 %v154_v7, %v136_v33 }
 0x161   :  { %171 = vst [vmem:[#allocation5 + $0x20] sm:$0xff] %v163_v34  ;;  %172 = vst [vmem:[#allocation5 + $0x28] sm:$0xff] %v164_v35 }
 0x162   :  { %173 = vst [vmem:[#allocation5 + $0x30] sm:$0xff] %v165_v24  ;;  %174 = vst [vmem:[#allocation5 + $0x38] sm:$0xff] %v166_v36 }
 0x163   :  { %235 = shalt.err (!%p232_p9)
}
 0x164   :  { %186 = dma.vmem_to_hbm [thread:$0]  %s181_s2, 1024, %s333_s3, [#allocation4], %s249_s15, %s249_s15, %s250_s16  }
 0x165   :  { %246 = dma.done.wait [#allocation4], 1024  }
 0x166   :  { %247 = vsyncadd [#allocation4], 4294966272 }
 0x167   :  { %190 = vsyncpa [#allocation3], 1 }
 0x168   :  { %191 = vsyncpa [#allocation4], 1 }

</bundles_post_ra>
